<compile_context>
chip_gen: v5e
topology: v5e:2x2
jax: 0.10.0
libtpu: 0.0.40
codegen_flags: <defaults>
</compile_context>

<pallas_src>
import jax
import jax.numpy as jnp
import numpy as np
from jax.experimental import pallas as pl
from jax.experimental.pallas import tpu as pltpu

_GROUP = 256               # input-lane group size for the W-direction matmul
_GROUP_OUT = _GROUP // 2
_MIB = 1 << 20
_TILE_BUDGET_BYTES = 16 * _MIB   # double-buffered block working-set target


def _ceil_half(n: int) -> int:
    return (n + 1) // 2


def _round_up(n: int, m: int) -> int:
    return ((n + m - 1) // m) * m


def _pool_matrix(w_in: int) -> np.ndarray:
    """(w_in, ceil(w_in/2)) matrix doing the W-direction 2x average pool with
    count_include_pad=False; the H-direction 1/2 is folded in (entries 0.25
    for full column pairs, 0.5 for a trailing single column)."""
    w_out = _ceil_half(w_in)
    m = np.zeros((w_in, w_out), np.float32)
    for j in range(w_out):
        cols = [c for c in (2 * j, 2 * j + 1) if c < w_in]
        for c in cols:
            m[c, j] = 0.5 / len(cols)
    return m


def _collect_mats(ws):
    """Constant pooling matrices shared across grid steps (loaded once; the
    block index never changes so the DMA is elided after the first step)."""
    mats, slots, cache = [], {}, {}
    n_full = [ws[k] // _GROUP for k in range(3)]
    rems = [ws[k] % _GROUP for k in range(3)]
    if any(n_full):
        slots["full"] = len(mats)
        mats.append(_pool_matrix(_GROUP))
    for k in range(3):
        r = rems[k]
        if r:
            if r not in cache:
                cache[r] = len(mats)
                mats.append(_pool_matrix(r))
            slots[("rem", k)] = cache[r]
    return mats, slots, n_full, rems


# ----------------------------------------------------------------------------
# Kernel factory: fused 3-level pyramid for one (plane-block, row-tile) block.
# ----------------------------------------------------------------------------
def _make_kernel(ncb, h0, ws, true_hs, n_mats, slots, n_full, rems):
    hs = [h0, h0 // 2, h0 // 4]          # padded (even) per-level source rows

    def kernel(*refs):
        mat_vals = [refs[i][...] for i in range(n_mats)]
        x_ref = refs[n_mats]
        out_refs = refs[n_mats + 1:n_mats + 4]
        srcs = (x_ref, out_refs[0], out_refs[1])

        for k in range(3):
            src, out_ref = srcs[k], out_refs[k]
            h, wk, wo = hs[k], ws[k], ws[k + 1]
            h2 = h // 2
            th = true_hs[k]              # true (unpadded) valid source rows

            # H-direction pair sum: two sublane-strided reads (stride 2).
            even = src[:, pl.ds(0, h2, 2), :].astype(jnp.float32)
            odd = src[:, pl.ds(1, h2, 2), :].astype(jnp.float32)
            rowsum = even + odd                              # (ncb, h2, wk)

            # count_include_pad=False fix for odd / zero-padded H (only in the
            # padded full-frame path; the tiled path skips this entirely).
            if th != h or th % 2:
                full_rows = th // 2
                valid_rows = _ceil_half(th)
                r = jax.lax.broadcasted_iota(jnp.int32, (1, h2, 1), 1)
                scale = jnp.where(
                    r < full_rows, 1.0,
                    jnp.where(r < valid_rows, 2.0, 0.0)).astype(jnp.float32)
                rowsum = rowsum * scale

            rowsum = rowsum.reshape(ncb * h2, wk)            # free (major dims)

            # W-direction pooling: small constant matmuls on the MXU, results
            # stored straight into 128-lane-aligned slices of the output ref.
            for g in range(n_full[k]):
                part = jnp.dot(rowsum[:, g * _GROUP:(g + 1) * _GROUP],
                               mat_vals[slots["full"]],
                               preferred_element_type=jnp.float32)
                out_ref[:, :, g * _GROUP_OUT:(g + 1) * _GROUP_OUT] = (
                    part.reshape(ncb, h2, _GROUP_OUT).astype(out_ref.dtype))
            if rems[k]:
                lo_in = n_full[k] * _GROUP
                lo_out = n_full[k] * _GROUP_OUT
                part = jnp.dot(rowsum[:, lo_in:wk],
                               mat_vals[slots[("rem", k)]],
                               preferred_element_type=jnp.float32)
                out_ref[:, :, lo_out:wo] = (
                    part.reshape(ncb, h2, wo - lo_out).astype(out_ref.dtype))

    return kernel


# ----------------------------------------------------------------------------
# Tiling / VMEM budgeting (padded (8,128)-tile bytes, double-buffered).
# ----------------------------------------------------------------------------
def _block_bytes(ncb, rt, w, itemsize):
    total = 2 * ncb * _round_up(rt, 8) * _round_up(w, 128) * itemsize
    h = rt
    for _ in range(3):
        h //= 2
        w = _ceil_half(w)
        total += 2 * ncb * _round_up(max(h, 1), 8) * _round_up(w, 128) * itemsize
    return total


def _pick_tiles(nc, hp, h, w, itemsize):
    cands = []
    if hp == h and hp % 64 == 0:
        # multiples of 64 so the s1/s2/s3 output block rows stay multiples of 8
        cands = [c for c in range(64, hp, 64) if hp % c == 0]
    cands.append(hp)
    fitting = [c for c in cands if _block_bytes(1, c, w, itemsize) <= _TILE_BUDGET_BYTES]
    row_tile = max(fitting) if fitting else min(cands)
    ncb = 1
    for d in range(1, nc + 1):
        if nc % d == 0 and _block_bytes(d, row_tile, w, itemsize) <= _TILE_BUDGET_BYTES:
            ncb = d
    return row_tile, ncb


# ----------------------------------------------------------------------------
# pallas_call wrapper over (N*C, H, W) planes.
# ----------------------------------------------------------------------------
def _avgpool_pyramid_planes(x):
    nc, h, w = x.shape
    dtype = x.dtype
    itemsize = x.dtype.itemsize

    h1, w1 = _ceil_half(h), _ceil_half(w)
    h2_, w2 = _ceil_half(h1), _ceil_half(w1)
    h3, w3 = _ceil_half(h2_), _ceil_half(w2)
    ws = (w, w1, w2, w3)

    # Zero-pad H to a multiple of 8 only when needed (rare); counts for the
    # padded rows are handled in-kernel, and the pad rows are sliced off below.
    hp = _round_up(h, 8)
    if hp != h:
        x = jnp.pad(x, ((0, 0), (0, hp - h), (0, 0)))

    row_tile, ncb = _pick_tiles(nc, hp, h, w, itemsize)
    n_row = hp // row_tile
    n_nc = nc // ncb

    if n_row == 1:
        true_hs = (h, h1, h2_)
    else:                               # tiled path: every row tile fully valid
        true_hs = (row_tile, row_tile // 2, row_tile // 4)

    hp_out = (hp // 2, hp // 4, hp // 8)
    rt_out = (row_tile // 2, row_tile // 4, row_tile // 8)

    mats, slots, n_full, rems = _collect_mats(ws)
    kernel = _make_kernel(ncb, row_tile, ws, true_hs, len(mats), slots,
                          n_full, rems)

    mat_specs = [pl.BlockSpec(tuple(int(d) for d in m.shape),
                              lambda n, i: (0, 0)) for m in mats]
    in_specs = mat_specs + [pl.BlockSpec((ncb, row_tile, w),
                                         lambda n, i: (n, i, 0))]
    out_specs = tuple(pl.BlockSpec((ncb, rt_out[k], ws[k + 1]),
                                   lambda n, i: (n, i, 0)) for k in range(3))
    out_shape = tuple(jax.ShapeDtypeStruct((nc, hp_out[k], ws[k + 1]), dtype)
                      for k in range(3))

    # VMEM need: double-buffered blocks + level-0 f32 temporaries + matrices.
    need = _block_bytes(ncb, row_tile, w, itemsize)
    need += 4 * ncb * _round_up(row_tile // 2, 8) * _round_up(w, 128) * 4
    need += 2 * sum(int(m.size) for m in mats) * 4
    vmem_limit = int(min(max(need + 4 * _MIB, 32 * _MIB), 100 * _MIB))

    s1, s2, s3 = pl.pallas_call(
        kernel,
        out_shape=out_shape,
        grid=(n_nc, n_row),
        in_specs=in_specs,
        out_specs=out_specs,
        compiler_params=pltpu.CompilerParams(
            dimension_semantics=("parallel", "parallel"),
            vmem_limit_bytes=vmem_limit),
    )(*[jnp.asarray(m) for m in mats], x)

    if hp_out[0] != h1:
        s1 = s1[:, :h1]
    if hp_out[1] != h2_:
        s2 = s2[:, :h2_]
    if hp_out[2] != h3:
        s3 = s3[:, :h3]
    return s1, s2, s3


# ----------------------------------------------------------------------------
# Public wrapper: matches AvgPool.forward (NCHW or NTCHW in, pyramid out).
# ----------------------------------------------------------------------------
def avg_pool_pyramid(s0):
    if s0.ndim == 5:
        lead = s0.shape[:3]             # (B, T, C)
    elif s0.ndim == 4:
        lead = s0.shape[:2]             # (N, C)
    else:
        raise ValueError("expected a 4-D (NCHW) or 5-D (NTCHW) input")
    # Pure metadata reshape: channels fold into the plane axis, W stays minor.
    x = s0.reshape((-1,) + s0.shape[-2:])
    s1, s2, s3 = _avgpool_pyramid_planes(x)
    return tuple(v.reshape(lead + v.shape[-2:]) for v in (s1, s2, s3))


# ----------------------------------------------------------------------------
# Pure-JAX reference (PyTorch AvgPool2d(2,2,ceil_mode,count_include_pad=False)).
# ----------------------------------------------------------------------------
def _ref_avgpool2x2(x):   # NCHW
    n, c, hh, ww = x.shape
    ho, wo = _ceil_half(hh), _ceil_half(ww)
    xp = jnp.pad(x, ((0, 0), (0, 0), (0, 2 * ho - hh), (0, 2 * wo - ww)))
    s = xp.reshape(n, c, ho, 2, wo, 2).sum(axis=(3, 5))
    ch = jnp.minimum(2, hh - 2 * jnp.arange(ho)).astype(x.dtype)
    cw = jnp.minimum(2, ww - 2 * jnp.arange(wo)).astype(x.dtype)
    return s / (ch[:, None] * cw[None, :])


def _ref_avg_pool_pyramid(s0):
    if s0.ndim == 5:
        b, t = s0.shape[:2]
        x = s0.reshape(b * t, *s0.shape[2:])
    else:
        x = s0
    s1 = _ref_avgpool2x2(x)
    s2 = _ref_avgpool2x2(s1)
    s3 = _ref_avgpool2x2(s2)
    if s0.ndim == 5:
        s1, s2, s3 = (v.reshape(b, t, *v.shape[1:]) for v in (s1, s2, s3))
    return s1, s2, s3


if __name__ == "__main__":
    key = jax.random.PRNGKey(0)
    k5, k4 = jax.random.split(key)

    # Time-series path: (B, T, C, H, W), even dims.
    B, T, C, H, W = 2, 4, 3, 16, 16
    x5 = jax.random.normal(k5, (B, T, C, H, W), jnp.float32)
    s1, s2, s3 = jax.jit(avg_pool_pyramid)(x5)
    jax.block_until_ready((s1, s2, s3))
    assert s1.shape == (B, T, C, 8, 8)
    assert s2.shape == (B, T, C, 4, 4)
    assert s3.shape == (B, T, C, 2, 2)
    r1, r2, r3 = _ref_avg_pool_pyramid(x5)
    np.testing.assert_allclose(np.asarray(s1), np.asarray(r1), atol=1e-5, rtol=1e-5)
    np.testing.assert_allclose(np.asarray(s2), np.asarray(r2), atol=1e-5, rtol=1e-5)
    np.testing.assert_allclose(np.asarray(s3), np.asarray(r3), atol=1e-5, rtol=1e-5)

    # Single-frame path with odd spatial dims (ceil_mode + partial windows).
    x4 = jax.random.normal(k4, (2, 4, 15, 13), jnp.float32)
    t1, t2, t3 = jax.jit(avg_pool_pyramid)(x4)
    jax.block_until_ready((t1, t2, t3))
    assert t1.shape == (2, 4, 8, 7)
    assert t2.shape == (2, 4, 4, 4)
    assert t3.shape == (2, 4, 2, 2)
    q1, q2, q3 = _ref_avg_pool_pyramid(x4)
    np.testing.assert_allclose(np.asarray(t1), np.asarray(q1), atol=1e-5, rtol=1e-5)
    np.testing.assert_allclose(np.asarray(t2), np.asarray(q2), atol=1e-5, rtol=1e-5)
    np.testing.assert_allclose(np.asarray(t3), np.asarray(q3), atol=1e-5, rtol=1e-5)

    print("KERNEL_OK")
</pallas_src>

<mosaic_0001>
module attributes {stable_mosaic.version = 11 : i64} {
  func.func @kernel(%arg0: i32, %arg1: i32, %arg2: memref<16x8xf32, #tpu.memory_space<vmem>>, %arg3: memref<8x4xf32, #tpu.memory_space<vmem>>, %arg4: memref<4x2xf32, #tpu.memory_space<vmem>>, %arg5: memref<24x16x16xf32, #tpu.memory_space<vmem>>, %arg6: memref<24x8x8xf32, #tpu.memory_space<vmem>>, %arg7: memref<24x4x4xf32, #tpu.memory_space<vmem>>, %arg8: memref<24x2x2xf32, #tpu.memory_space<vmem>>) attributes {dimension_semantics = [#tpu.dimension_semantics<parallel>, #tpu.dimension_semantics<parallel>], iteration_bounds = array<i64: 1, 1>, scalar_prefetch = 0 : i64, scratch_operands = 0 : i64, tpu.core_type = #tpu.core_type<tc>, window_params = [{pipeline_mode = #tpu.pipeline_mode<synchronous>, transform_indices = @transform_0, window_bounds = array<i64: 16, 8>}, {pipeline_mode = #tpu.pipeline_mode<synchronous>, transform_indices = @transform_1, window_bounds = array<i64: 8, 4>}, {pipeline_mode = #tpu.pipeline_mode<synchronous>, transform_indices = @transform_2, window_bounds = array<i64: 4, 2>}, {transform_indices = @transform_3, window_bounds = array<i64: 24, 16, 16>}, {transform_indices = @transform_4, window_bounds = array<i64: 24, 8, 8>}, {transform_indices = @transform_5, window_bounds = array<i64: 24, 4, 4>}, {transform_indices = @transform_6, window_bounds = array<i64: 24, 2, 2>}]} {
    %c0 = arith.constant 0 : index
    %c0_0 = arith.constant 0 : index
    %0 = vector.load %arg2[%c0, %c0_0] : memref<16x8xf32, #tpu.memory_space<vmem>>, vector<16x8xf32>
    %c0_1 = arith.constant 0 : index
    %c0_2 = arith.constant 0 : index
    %1 = vector.load %arg3[%c0_1, %c0_2] : memref<8x4xf32, #tpu.memory_space<vmem>>, vector<8x4xf32>
    %c0_3 = arith.constant 0 : index
    %c0_4 = arith.constant 0 : index
    %2 = vector.load %arg4[%c0_3, %c0_4] : memref<4x2xf32, #tpu.memory_space<vmem>>, vector<4x2xf32>
    %c0_5 = arith.constant 0 : index
    %c0_6 = arith.constant 0 : index
    %c0_7 = arith.constant 0 : index
    %3 = tpu.strided_load %arg5[%c0_5, %c0_6, %c0_7] {strides = array<i32: 1, 2, 1>} : memref<24x16x16xf32, #tpu.memory_space<vmem>>, vector<24x8x16xf32>
    %c0_8 = arith.constant 0 : index
    %c1 = arith.constant 1 : index
    %c0_9 = arith.constant 0 : index
    %4 = tpu.strided_load %arg5[%c0_8, %c1, %c0_9] {strides = array<i32: 1, 2, 1>} : memref<24x16x16xf32, #tpu.memory_space<vmem>>, vector<24x8x16xf32>
    %5 = arith.addf %3, %4 : vector<24x8x16xf32>
    %6 = vector.shape_cast %5 : vector<24x8x16xf32> to vector<192x16xf32>
    %cst = arith.constant dense<0.000000e+00> : vector<192x8xf32>
    %7 = tpu.matmul %6, %0, %cst {dimension_numbers = #tpu.dot_dimension_numbers<[1], [0], [0], [1], [0, 0, 1, 1], [], []>} : vector<192x16xf32>, vector<16x8xf32>, vector<192x8xf32> -> vector<192x8xf32>
    %8 = vector.shape_cast %7 : vector<192x8xf32> to vector<24x8x8xf32>
    %c0_10 = arith.constant 0 : index
    %c0_11 = arith.constant 0 : index
    %c0_12 = arith.constant 0 : index
    %9 = vector.load %arg6[%c0_10, %c0_11, %c0_12] : memref<24x8x8xf32, #tpu.memory_space<vmem>>, vector<24x8x8xf32>
    tpu.vector_store %arg6[%c0_10, %c0_11, %c0_12], %8 {strides = array<i32>} : memref<24x8x8xf32, #tpu.memory_space<vmem>>, vector<24x8x8xf32>,
    %c0_13 = arith.constant 0 : index
    %c0_14 = arith.constant 0 : index
    %c0_15 = arith.constant 0 : index
    %10 = tpu.strided_load %arg6[%c0_13, %c0_14, %c0_15] {strides = array<i32: 1, 2, 1>} : memref<24x8x8xf32, #tpu.memory_space<vmem>>, vector<24x4x8xf32>
    %c0_16 = arith.constant 0 : index
    %c1_17 = arith.constant 1 : index
    %c0_18 = arith.constant 0 : index
    %11 = tpu.strided_load %arg6[%c0_16, %c1_17, %c0_18] {strides = array<i32: 1, 2, 1>} : memref<24x8x8xf32, #tpu.memory_space<vmem>>, vector<24x4x8xf32>
    %12 = arith.addf %10, %11 : vector<24x4x8xf32>
    %13 = vector.shape_cast %12 : vector<24x4x8xf32> to vector<96x8xf32>
    %cst_19 = arith.constant dense<0.000000e+00> : vector<96x4xf32>
    %14 = tpu.matmul %13, %1, %cst_19 {dimension_numbers = #tpu.dot_dimension_numbers<[1], [0], [0], [1], [0, 0, 1, 1], [], []>} : vector<96x8xf32>, vector<8x4xf32>, vector<96x4xf32> -> vector<96x4xf32>
    %15 = vector.shape_cast %14 : vector<96x4xf32> to vector<24x4x4xf32>
    %c0_20 = arith.constant 0 : index
    %c0_21 = arith.constant 0 : index
    %c0_22 = arith.constant 0 : index
    %16 = vector.load %arg7[%c0_20, %c0_21, %c0_22] : memref<24x4x4xf32, #tpu.memory_space<vmem>>, vector<24x4x4xf32>
    tpu.vector_store %arg7[%c0_20, %c0_21, %c0_22], %15 {strides = array<i32>} : memref<24x4x4xf32, #tpu.memory_space<vmem>>, vector<24x4x4xf32>,
    %c0_23 = arith.constant 0 : index
    %c0_24 = arith.constant 0 : index
    %c0_25 = arith.constant 0 : index
    %17 = tpu.strided_load %arg7[%c0_23, %c0_24, %c0_25] {strides = array<i32: 1, 2, 1>} : memref<24x4x4xf32, #tpu.memory_space<vmem>>, vector<24x2x4xf32>
    %c0_26 = arith.constant 0 : index
    %c1_27 = arith.constant 1 : index
    %c0_28 = arith.constant 0 : index
    %18 = tpu.strided_load %arg7[%c0_26, %c1_27, %c0_28] {strides = array<i32: 1, 2, 1>} : memref<24x4x4xf32, #tpu.memory_space<vmem>>, vector<24x2x4xf32>
    %19 = arith.addf %17, %18 : vector<24x2x4xf32>
    %20 = vector.shape_cast %19 : vector<24x2x4xf32> to vector<48x4xf32>
    %cst_29 = arith.constant dense<0.000000e+00> : vector<48x2xf32>
    %21 = tpu.matmul %20, %2, %cst_29 {dimension_numbers = #tpu.dot_dimension_numbers<[1], [0], [0], [1], [0, 0, 1, 1], [], []>} : vector<48x4xf32>, vector<4x2xf32>, vector<48x2xf32> -> vector<48x2xf32>
    %22 = vector.shape_cast %21 : vector<48x2xf32> to vector<24x2x2xf32>
    %c0_30 = arith.constant 0 : index
    %c0_31 = arith.constant 0 : index
    %c0_32 = arith.constant 0 : index
    %23 = vector.load %arg8[%c0_30, %c0_31, %c0_32] : memref<24x2x2xf32, #tpu.memory_space<vmem>>, vector<24x2x2xf32>
    tpu.vector_store %arg8[%c0_30, %c0_31, %c0_32], %22 {strides = array<i32>} : memref<24x2x2xf32, #tpu.memory_space<vmem>>, vector<24x2x2xf32>,
    return
  }
  func.func @transform_0(%arg0: i32, %arg1: i32) -> (i32, i32) {
    %c0_i32 = arith.constant 0 : i32
    %c0_i32_0 = arith.constant 0 : i32
    %c0_i32_1 = arith.constant 0 : i32
    return %c0_i32, %c0_i32_0 : i32, i32
  }
  func.func @transform_1(%arg0: i32, %arg1: i32) -> (i32, i32) {
    %c0_i32 = arith.constant 0 : i32
    %c0_i32_0 = arith.constant 0 : i32
    %c0_i32_1 = arith.constant 0 : i32
    return %c0_i32, %c0_i32_0 : i32, i32
  }
  func.func @transform_2(%arg0: i32, %arg1: i32) -> (i32, i32) {
    %c0_i32 = arith.constant 0 : i32
    %c0_i32_0 = arith.constant 0 : i32
    %c0_i32_1 = arith.constant 0 : i32
    return %c0_i32, %c0_i32_0 : i32, i32
  }
  func.func @transform_3(%arg0: i32, %arg1: i32) -> (i32, i32, i32) {
    %c0_i32 = arith.constant 0 : i32
    %c0_i32_0 = arith.constant 0 : i32
    return %arg0, %arg1, %c0_i32 : i32, i32, i32
  }
  func.func @transform_4(%arg0: i32, %arg1: i32) -> (i32, i32, i32) {
    %c0_i32 = arith.constant 0 : i32
    %c0_i32_0 = arith.constant 0 : i32
    return %arg0, %arg1, %c0_i32 : i32, i32, i32
  }
  func.func @transform_5(%arg0: i32, %arg1: i32) -> (i32, i32, i32) {
    %c0_i32 = arith.constant 0 : i32
    %c0_i32_0 = arith.constant 0 : i32
    return %arg0, %arg1, %c0_i32 : i32, i32, i32
  }
  func.func @transform_6(%arg0: i32, %arg1: i32) -> (i32, i32, i32) {
    %c0_i32 = arith.constant 0 : i32
    %c0_i32_0 = arith.constant 0 : i32
    return %arg0, %arg1, %c0_i32 : i32, i32, i32
  }
}

</mosaic_0001>

<bundles_post_ra>
// kernel: avg_pool_pyramid.1
= control target key start
LH: loop header
LB: loop body
LE: loop exit
PB: predicated region body
PF: predicated region fallthrough
CT: control target
= control target key end

     0   :  { %12 = vsyncpa [#allocation3], 0  ;;  %s1527_s0 = inlined_call_operand.hbm [shape: f32[16,8], index: 0, kind: input, shape index: {}]   ;;  %s1528_s1 = inlined_call_operand.hbm [shape: f32[8,4], index: 1, kind: input, shape index: {}]   ;;  %s1529_s2 = inlined_call_operand.hbm [shape: f32[4,2], index: 2, kind: input, shape index: {}]   ;;  %s1530_s3 = inlined_call_operand.hbm [shape: f32[24,16,16], index: 3, kind: input, shape index: {}]   ;;  %s1531_s4 = inlined_call_operand.hbm [shape: f32[24,8,8], index: 4, kind: output, shape index: {0}]   ;;  %s1532_s5 = inlined_call_operand.hbm [shape: f32[24,4,4], index: 5, kind: output, shape index: {1}]   ;;  %s1533_s6 = inlined_call_operand.vmem [shape: f32[24,2,2], index: 6, kind: output, shape index: {2}]  }
   0x1   :  { %13 = vsyncpa [#allocation6], 0 }
   0x2   :  { %14 = vsyncpa [#allocation9], 0 }
   0x3   :  { %15 = vsyncpa [#allocation4], 0  ;;  %s35_s23 = sshll.u32 %s1528_s1, 4  ;;  %s36_s23 = int_to_ptr.hbm [resolvable:$true] %s35_s23 }
   0x4   :  { %16 = vsyncpa [#allocation12], 0  ;;  %s1269_s24 = smov [#allocation5]   ;;  %s21_s28 = sshll.u32 %s1527_s0, 4  ;;  %s22_s28 = int_to_ptr.hbm [resolvable:$true] %s21_s28 }
   0x5   :  { %s37_s25 = sshll.u32 %s1269_s24, 4  ;;  %s1270_s29 = smov [#allocation2]   ;;  %s38_s25 = int_to_ptr.vmem [resolvable:$true] %s37_s25 }
   0x6   :  { %40 = dma.hbm_to_vmem [thread:$0]  %s36_s23, 128, %s38_s25, [#allocation6]  }
   0x7   :  { %s23_s30 = sshll.u32 %s1270_s29, 4  ;;  %s1271_s7 = smov 128   ;;  %s24_s30 = int_to_ptr.vmem [resolvable:$true] %s23_s30 }
   0x8   :  { %s1272_s8 = smov 8   ;;  %s46_s10 = sshll.u32 %s1529_s2, 4  ;;  %s47_s10 = int_to_ptr.hbm [resolvable:$true] %s46_s10 }
   0x9   :  { %29 = dma.hbm_to_vmem [thread:$0]  %s22_s28, 256, %s24_s30, [#allocation3], %s1271_s7, %s1271_s7, %s1272_s8  }
   0xa   :  { %s1273_s11 = smov [#allocation7]   ;;  %s56_s14 = sshll.u32 %s1530_s3, 4  ;;  %s57_s14 = int_to_ptr.hbm [resolvable:$true] %s56_s14 }
   0xb   :  { %s48_s12 = sshll.u32 %s1273_s11, 4  ;;  %s1274_s15 = smov [#allocation8]   ;;  %s49_s12 = int_to_ptr.vmem [resolvable:$true] %s48_s12 }
   0xc   :  { %51 = dma.hbm_to_vmem [thread:$0]  %s47_s10, 64, %s49_s12, [#allocation6]  }
   0xd   :  { %s58_s16 = sshll.u32 %s1274_s15, 4  ;;  %s59_s16 = int_to_ptr.vmem [resolvable:$true] %s58_s16 }
   0xe   :  { %64 = dma.hbm_to_vmem [thread:$0]  %s57_s14, 6144, %s59_s16, [#allocation9], %s1271_s7, %s1271_s7, %s1272_s8  }
   0xf   :  { %1259 = dma.done.wait [#allocation3], 256  }
  0x10   :  { %1260 = vsyncadd [#allocation3], 4294967040 }
  0x11   :  { %1261 = dma.done.wait [#allocation6], 192  }
  0x12   :  { %1262 = vsyncadd [#allocation6], 4294967104 }
  0x13   :  { %1263 = dma.done.wait [#allocation9], 6144  }
  0x14   :  { %1264 = vsyncadd [#allocation9], 4294961152  ;;  %v82_v0 = vld [vmem:[#allocation2 + $0x8] sm:$0xff]  ;;  %v81_v1 = vld [vmem:[#allocation2] sm:$0xff]  ;;  %vm204_vm0 = vcmask 130048   ;;  %vm366_vm1 = vcmask 64512  }
  0x15   :  { %v85_v2 = vld [vmem:[#allocation8] ss:$2 sm:$0xff]  ;;  %291 = vmatpush.msra.mxu0 %v82_v0  ;;  %v133_v3 = vld [vmem:[#allocation8 + $0x1] ss:$2 sm:$0xff]  ;;  %1101 = vmatpush.msra.mxu3 %v82_v0  ;;  %v111_v5 = vld [vmem:[#allocation8 + $0xd0] ss:$2 sm:$0xff] }
  0x16   :  { %v180_v4 = vadd.f32 %v133_v3, %v85_v2  ;;  %1100 = vmatpush.msra.mxu2 %v82_v0  ;;  %v159_v6 = vld [vmem:[#allocation8 + $0xd1] ss:$2 sm:$0xff]  ;;  %v87_v7 = vld [vmem:[#allocation8 + $0x10] ss:$2 sm:$0xff]  ;;  %v113_v13 = vld [vmem:[#allocation8 + $0xe0] ss:$2 sm:$0xff] }
  0x17   :  { %292 = vmatpush.msra.mxu0 %v81_v1  ;;  %1103 = vmatpush.msra.mxu3 %v81_v1  ;;  %v193_v8 = vadd.f32 %v159_v6, %v111_v5  ;;  %v135_v9 = vld [vmem:[#allocation8 + $0x11] ss:$2 sm:$0xff]  ;;  %v107_v10 = vld [vmem:[#allocation8 + $0xb0] ss:$2 sm:$0xff]  ;;  %v161_v14 = vld [vmem:[#allocation8 + $0xe1] ss:$2 sm:$0xff] }
  0x18   :  { %1057 = vmatmul.msk.f32.vlgmr.msra.gmra.mxu0 %vm204_vm0, %v180_v4  ;;  %1102 = vmatpush.msra.mxu2 %v81_v1  ;;  %v155_v11 = vld [vmem:[#allocation8 + $0xb1] ss:$2 sm:$0xff]  ;;  %v181_v15 = vadd.f32 %v135_v9, %v87_v7  ;;  %v194_v16 = vadd.f32 %v161_v14, %v113_v13  ;;  %v109_v17 = vld [vmem:[#allocation8 + $0xc0] ss:$2 sm:$0xff]  ;;  %v157_v18 = vld [vmem:[#allocation8 + $0xc1] ss:$2 sm:$0xff] }
  0x19   :  { %1070 = vmatmul.msk.f32.vlgmr.msra.gmra.mxu3 %vm204_vm0, %v193_v8  ;;  %v191_v12 = vadd.f32 %v155_v11, %v107_v10  ;;  %v192_v19 = vadd.f32 %v157_v18, %v109_v17  ;;  %v89_v20 = vld [vmem:[#allocation8 + $0x20] ss:$2 sm:$0xff]  ;;  %v137_v21 = vld [vmem:[#allocation8 + $0x21] ss:$2 sm:$0xff]  ;;  %v115_v22 = vld [vmem:[#allocation8 + $0xf0] ss:$2 sm:$0xff] }
  0x1a   :  { %v163_v23 = vld [vmem:[#allocation8 + $0xf1] ss:$2 sm:$0xff]  ;;  %v182_v24 = vadd.f32 %v137_v21, %v89_v20  ;;  %v91_v26 = vld [vmem:[#allocation8 + $0x30] ss:$2 sm:$0xff]  ;;  %v117_v28 = vld [vmem:[#allocation8 + $0x100] ss:$2 sm:$0xff] }
  0x1b   :  { %1068 = vmatmul.msk.f32.vlgmr.msra.gmra.mxu2 %vm204_vm0, %v191_v12  ;;  %v195_v25 = vadd.f32 %v163_v23, %v115_v22  ;;  %v139_v27 = vld [vmem:[#allocation8 + $0x31] ss:$2 sm:$0xff]  ;;  %v165_v29 = vld [vmem:[#allocation8 + $0x101] ss:$2 sm:$0xff]  ;;  %v93_v32 = vld [vmem:[#allocation8 + $0x40] ss:$2 sm:$0xff] }
  0x1c   :  { %v183_v30 = vadd.f32 %v139_v27, %v91_v26  ;;  %v196_v31 = vadd.f32 %v165_v29, %v117_v28  ;;  %v141_v33 = vld [vmem:[#allocation8 + $0x41] ss:$2 sm:$0xff]  ;;  %v119_v34 = vld [vmem:[#allocation8 + $0x110] ss:$2 sm:$0xff]  ;;  %v167_v35 = vld [vmem:[#allocation8 + $0x111] ss:$2 sm:$0xff] }
  0x1d   :  { %v184_v36 = vadd.f32 %v141_v33, %v93_v32  ;;  %v197_v37 = vadd.f32 %v167_v35, %v119_v34  ;;  %v95_v38 = vld [vmem:[#allocation8 + $0x50] ss:$2 sm:$0xff]  ;;  %v143_v39 = vld [vmem:[#allocation8 + $0x51] ss:$2 sm:$0xff]  ;;  %v121_v40 = vld [vmem:[#allocation8 + $0x120] ss:$2 sm:$0xff] }
  0x1e   :  { %v169_v41 = vld [vmem:[#allocation8 + $0x121] ss:$2 sm:$0xff]  ;;  %v185_v42 = vadd.f32 %v143_v39, %v95_v38  ;;  %v97_v44 = vld [vmem:[#allocation8 + $0x60] ss:$2 sm:$0xff]  ;;  %v123_v46 = vld [vmem:[#allocation8 + $0x130] ss:$2 sm:$0xff] }
  0x1f   :  { %v198_v43 = vadd.f32 %v169_v41, %v121_v40  ;;  %v145_v45 = vld [vmem:[#allocation8 + $0x61] ss:$2 sm:$0xff]  ;;  %v171_v47 = vld [vmem:[#allocation8 + $0x131] ss:$2 sm:$0xff]  ;;  %v99_v50 = vld [vmem:[#allocation8 + $0x70] ss:$2 sm:$0xff] }
  0x20   :  { %1058 = vmatmul.msk.f32.gmra.mxu0 %vm204_vm0, %v181_v15  ;;  %v186_v48 = vadd.f32 %v145_v45, %v97_v44  ;;  %v199_v49 = vadd.f32 %v171_v47, %v123_v46  ;;  %v147_v51 = vld [vmem:[#allocation8 + $0x71] ss:$2 sm:$0xff]  ;;  %v125_v52 = vld [vmem:[#allocation8 + $0x140] ss:$2 sm:$0xff]  ;;  %v173_v53 = vld [vmem:[#allocation8 + $0x141] ss:$2 sm:$0xff] }
  0x21   :  { %1071 = vmatmul.msk.f32.gmra.mxu3 %vm204_vm0, %v194_v16  ;;  %v187_v54 = vadd.f32 %v147_v51, %v99_v50  ;;  %v200_v55 = vadd.f32 %v173_v53, %v125_v52  ;;  %v101_v56 = vld [vmem:[#allocation8 + $0x80] ss:$2 sm:$0xff]  ;;  %v149_v57 = vld [vmem:[#allocation8 + $0x81] ss:$2 sm:$0xff]  ;;  %v127_v58 = vld [vmem:[#allocation8 + $0x150] ss:$2 sm:$0xff] }
  0x22   :  { %v175_v59 = vld [vmem:[#allocation8 + $0x151] ss:$2 sm:$0xff]  ;;  %v188_v60 = vadd.f32 %v149_v57, %v101_v56  ;;  %v103_v62 = vld [vmem:[#allocation8 + $0x90] ss:$2 sm:$0xff]  ;;  %v129_v0 = vld [vmem:[#allocation8 + $0x160] ss:$2 sm:$0xff] }
  0x23   :  { %1069 = vmatmul.msk.f32.gmra.mxu2 %vm204_vm0, %v192_v19  ;;  %v201_v61 = vadd.f32 %v175_v59, %v127_v58  ;;  %v151_v63 = vld [vmem:[#allocation8 + $0x91] ss:$2 sm:$0xff]  ;;  %v177_v1 = vld [vmem:[#allocation8 + $0x161] ss:$2 sm:$0xff]  ;;  %v105_v4 = vld [vmem:[#allocation8 + $0xa0] ss:$2 sm:$0xff] }
  0x24   :  { %v189_v2 = vadd.f32 %v151_v63, %v103_v62  ;;  %v202_v3 = vadd.f32 %v177_v1, %v129_v0  ;;  %v153_v5 = vld [vmem:[#allocation8 + $0xa1] ss:$2 sm:$0xff]  ;;  %v131_v6 = vld [vmem:[#allocation8 + $0x170] ss:$2 sm:$0xff]  ;;  %v179_v7 = vld [vmem:[#allocation8 + $0x171] ss:$2 sm:$0xff] }
  0x25   :  { %v190_v8 = vadd.f32 %v153_v5, %v105_v4  ;;  %v203_v9 = vadd.f32 %v179_v7, %v131_v6  ;;  %v83_v10 = vld [vmem:[#allocation5] sm:$0xff]  ;;  %vm690_vm2 = vcmask 27648   ;;  %vm908_vm3 = vcmask 1043456   ;;  %s1275_s2 = smov [#allocation10]   ;;  %s1020_s19 = sshll.u32 %s1531_s4, 4  ;;  %s1021_s19 = int_to_ptr.hbm [resolvable:$true] %s1020_s19 }
  0x26   :  { %616 = vmatpush.msra.mxu1 %v83_v10  ;;  %1104 = vmatpush.msrb.mxu2 %v83_v10  ;;  %vm895_vm4 = vcmask 31744   ;;  %s1018_s3 = sshll.u32 %s1275_s2, 4  ;;  %s1276_s20 = smov [#allocation11]   ;;  %vm989_vm5 = vcmask 9216   ;;  %s1019_s3 = int_to_ptr.vmem [resolvable:$true] %s1018_s3 }
  0x27   :  { %s1031_s21 = sshll.u32 %s1276_s20, 4  ;;  %s1033_s24 = sshll.u32 %s1532_s5, 4  ;;  %s1032_s21 = int_to_ptr.vmem [resolvable:$true] %s1031_s21  ;;  %s1034_s24 = int_to_ptr.hbm [resolvable:$true] %s1033_s24 }
  0x28   :  { %1059 = vmatmul.msk.f32.gmra.mxu0 %vm204_vm0, %v182_v24  ;;  %s1277_s25 = smov 64   ;;  %s1278_s26 = smov 4  }
  0x29   :  { %1072 = vmatmul.msk.f32.gmra.mxu3 %vm204_vm0, %v195_v25 }
  0x30   :  { %1060 = vmatmul.msk.f32.gmra.mxu0 %vm204_vm0, %v183_v30 }
  0x31   :  { %1073 = vmatmul.msk.f32.gmra.mxu3 %vm204_vm0, %v196_v31 }
  0x38   :  { %1061 = vmatmul.msk.f32.gmra.mxu0 %vm204_vm0, %v184_v36 }
  0x39   :  { %1074 = vmatmul.msk.f32.gmra.mxu3 %vm204_vm0, %v197_v37 }
  0x40   :  { %1062 = vmatmul.msk.f32.gmra.mxu0 %vm204_vm0, %v185_v42 }
  0x41   :  { %1075 = vmatmul.msk.f32.gmra.mxu3 %vm204_vm0, %v198_v43 }
  0x48   :  { %1063 = vmatmul.msk.f32.gmra.mxu0 %vm204_vm0, %v186_v48 }
  0x49   :  { %1076 = vmatmul.msk.f32.gmra.mxu3 %vm204_vm0, %v199_v49 }
  0x50   :  { %1064 = vmatmul.msk.f32.gmra.mxu0 %vm204_vm0, %v187_v54 }
  0x51   :  { %1077 = vmatmul.msk.f32.gmra.mxu3 %vm204_vm0, %v200_v55 }
  0x58   :  { %1065 = vmatmul.msk.f32.gmra.mxu0 %vm204_vm0, %v188_v60 }
  0x59   :  { %1078 = vmatmul.msk.f32.gmra.mxu3 %vm204_vm0, %v201_v61 }
  0x60   :  { %1066 = vmatmul.msk.f32.gmra.mxu0 %vm204_vm0, %v189_v2 }
  0x61   :  { %1079 = vmatmul.msk.f32.gmra.mxu3 %vm204_vm0, %v202_v3 }
  0x68   :  { %1067 = vmatmul.msk.f32.gmra.mxu0 %vm204_vm0, %v190_v8 }
  0x69   :  { %1080 = vmatmul.msk.f32.gmra.mxu3 %vm204_vm0, %v203_v9 }
  0x95   :  { %v294_v11 = vpop.f32.mrf.mxu0 }
  0x96   :  { %367 = vst.msk [vmem:[#allocation10] sm:$0xff] %vm366_vm1, %v294_v11 }
  0x9c   :  { %v333_v15 = vpop.f32.mrf.mxu3 }
  0x9d   :  { %v391_v12 = vld [vmem:[#allocation10] ss:$2 sm:$0xf]  ;;  %v439_v13 = vld [vmem:[#allocation10 + $0x1] ss:$2 sm:$0xf]  ;;  %v297_v14 = vpop.f32.mrf.mxu0 }
  0x9e   :  { %v486_v16 = vadd.f32 %v439_v13, %v391_v12  ;;  %368 = vst.msk [vmem:[#allocation10 + $0x8] sm:$0xff] %vm366_vm1, %v297_v14  ;;  %v327_v17 = vpop.f32.mrf.mxu2 }
  0x9f   :  { %380 = vst.msk [vmem:[#allocation10 + $0x68] sm:$0xff] %vm366_vm1, %v333_v15 }
  0xa0   :  { %534 = vst [vmem:[#allocation1] ss:$2 sm:$0xff] %v486_v16 }
  0xa1   :  { %378 = vst.msk [vmem:[#allocation10 + $0x58] sm:$0xff] %vm366_vm1, %v327_v17 }
  0xa4   :  { %v336_v21 = vpop.f32.mrf.mxu3 }
  0xa5   :  { %v393_v18 = vld [vmem:[#allocation10 + $0x8] ss:$2 sm:$0xf]  ;;  %v441_v19 = vld [vmem:[#allocation10 + $0x9] ss:$2 sm:$0xf]  ;;  %v300_v20 = vpop.f32.mrf.mxu0 }
  0xa6   :  { %v487_v22 = vadd.f32 %v441_v19, %v393_v18  ;;  %369 = vst.msk [vmem:[#allocation10 + $0x10] sm:$0xff] %vm366_vm1, %v300_v20  ;;  %v330_v23 = vpop.f32.mrf.mxu2  ;;  %v417_v49 = vld [vmem:[#allocation10 + $0x68] ss:$2 sm:$0xf] }
  0xa7   :  { %381 = vst.msk [vmem:[#allocation10 + $0x70] sm:$0xff] %vm366_vm1, %v336_v21  ;;  %v465_v50 = vld [vmem:[#allocation10 + $0x69] ss:$2 sm:$0xf] }
  0xa8   :  { %536 = vst [vmem:[#allocation1 + $0x1] ss:$2 sm:$0xff] %v487_v22  ;;  %v413_v35 = vld [vmem:[#allocation10 + $0x58] ss:$2 sm:$0xf]  ;;  %v499_v57 = vadd.f32 %v465_v50, %v417_v49 }
  0xa9   :  { %379 = vst.msk [vmem:[#allocation10 + $0x60] sm:$0xff] %vm366_vm1, %v330_v23  ;;  %v461_v36 = vld [vmem:[#allocation10 + $0x59] ss:$2 sm:$0xf] }
  0xaa   :  { %v497_v40 = vadd.f32 %v461_v36, %v413_v35 }
  0xac   :  { %v339_v27 = vpop.f32.mrf.mxu3 }
  0xad   :  { %v395_v24 = vld [vmem:[#allocation10 + $0x10] ss:$2 sm:$0xf]  ;;  %v443_v25 = vld [vmem:[#allocation10 + $0x11] ss:$2 sm:$0xf]  ;;  %v303_v26 = vpop.f32.mrf.mxu0 }
  0xae   :  { %v488_v28 = vadd.f32 %v443_v25, %v395_v24  ;;  %370 = vst.msk [vmem:[#allocation10 + $0x18] sm:$0xff] %vm366_vm1, %v303_v26  ;;  %v419_v4 = vld [vmem:[#allocation10 + $0x70] ss:$2 sm:$0xf] }
  0xaf   :  { %v549_v29 = vld.sshfl [vmem:[#allocation1] sm:$0xff pattern:$0x75316420]  ;;  %382 = vst.msk [vmem:[#allocation10 + $0x78] sm:$0xff] %vm366_vm1, %v339_v27 }
  0xb0   :  { %538 = vst [vmem:[#allocation1 + $0x10] ss:$2 sm:$0xff] %v488_v28  ;;  %1081 = vmatmul.msk.f32.vlgmr.msra.gmra.mxu1 %vm366_vm1, %v549_v29  ;;  %v415_v51 = vld [vmem:[#allocation10 + $0x60] ss:$2 sm:$0xf] }
  0xb1   :  { %v463_v52 = vld [vmem:[#allocation10 + $0x61] ss:$2 sm:$0xf]  ;;  %v467_v5 = vld [vmem:[#allocation10 + $0x71] ss:$2 sm:$0xf] }
  0xb2   :  { %v498_v59 = vadd.f32 %v463_v52, %v415_v51  ;;  %v500_v13 = vadd.f32 %v467_v5, %v419_v4 }
  0xb4   :  { %v342_v33 = vpop.f32.mrf.mxu3 }
  0xb5   :  { %v397_v30 = vld [vmem:[#allocation10 + $0x18] ss:$2 sm:$0xf]  ;;  %v445_v31 = vld [vmem:[#allocation10 + $0x19] ss:$2 sm:$0xf]  ;;  %v306_v32 = vpop.f32.mrf.mxu0 }
  0xb6   :  { %v489_v34 = vadd.f32 %v445_v31, %v397_v30  ;;  %371 = vst.msk [vmem:[#allocation10 + $0x20] sm:$0xff] %vm366_vm1, %v306_v32  ;;  %v421_v2 = vld [vmem:[#allocation10 + $0x78] ss:$2 sm:$0xf] }
  0xb7   :  { %383 = vst.msk [vmem:[#allocation10 + $0x80] sm:$0xff] %vm366_vm1, %v342_v33  ;;  %v469_v3 = vld [vmem:[#allocation10 + $0x79] ss:$2 sm:$0xf] }
  0xb8   :  { %540 = vst [vmem:[#allocation1 + $0x11] ss:$2 sm:$0xff] %v489_v34  ;;  %v501_v10 = vadd.f32 %v469_v3, %v421_v2 }
  0xbc   :  { %v345_v41 = vpop.f32.mrf.mxu3 }
  0xbd   :  { %v399_v37 = vld [vmem:[#allocation10 + $0x20] ss:$2 sm:$0xf]  ;;  %v447_v38 = vld [vmem:[#allocation10 + $0x21] ss:$2 sm:$0xf]  ;;  %v309_v39 = vpop.f32.mrf.mxu0 }
  0xbe   :  { %v490_v42 = vadd.f32 %v447_v38, %v399_v37  ;;  %372 = vst.msk [vmem:[#allocation10 + $0x28] sm:$0xff] %vm366_vm1, %v309_v39  ;;  %v423_v27 = vld [vmem:[#allocation10 + $0x80] ss:$2 sm:$0xf] }
  0xbf   :  { %v550_v43 = vld.sshfl [vmem:[#allocation1 + $0x10] sm:$0xff pattern:$0x75316420]  ;;  %384 = vst.msk [vmem:[#allocation10 + $0x88] sm:$0xff] %vm366_vm1, %v345_v41 }
  0xc0   :  { %542 = vst [vmem:[#allocation1 + $0x20] ss:$2 sm:$0xff] %v490_v42  ;;  %1082 = vmatmul.msk.f32.gmra.mxu1 %vm366_vm1, %v550_v43  ;;  %v471_v28 = vld [vmem:[#allocation10 + $0x81] ss:$2 sm:$0xf] }
  0xc1   :  { %556 = vst [vmem:[#allocation1 + $0x11] ss:$2 sm:$0xff] %v497_v40  ;;  %v502_v35 = vadd.f32 %v471_v28, %v423_v27 }
  0xc4   :  { %v348_v47 = vpop.f32.mrf.mxu3 }
  0xc5   :  { %v401_v44 = vld [vmem:[#allocation10 + $0x28] ss:$2 sm:$0xf]  ;;  %v449_v45 = vld [vmem:[#allocation10 + $0x29] ss:$2 sm:$0xf]  ;;  %v312_v46 = vpop.f32.mrf.mxu0 }
  0xc6   :  { %v491_v48 = vadd.f32 %v449_v45, %v401_v44  ;;  %373 = vst.msk [vmem:[#allocation10 + $0x30] sm:$0xff] %vm366_vm1, %v312_v46  ;;  %v425_v23 = vld [vmem:[#allocation10 + $0x88] ss:$2 sm:$0xf] }
  0xc7   :  { %385 = vst.msk [vmem:[#allocation10 + $0x90] sm:$0xff] %vm366_vm1, %v348_v47  ;;  %v473_v24 = vld [vmem:[#allocation10 + $0x89] ss:$2 sm:$0xf] }
  0xc8   :  { %544 = vst [vmem:[#allocation1 + $0x21] ss:$2 sm:$0xff] %v491_v48  ;;  %v503_v32 = vadd.f32 %v473_v24, %v425_v23 }
  0xcc   :  { %v351_v56 = vpop.f32.mrf.mxu3 }
  0xcd   :  { %v403_v53 = vld [vmem:[#allocation10 + $0x30] ss:$2 sm:$0xf]  ;;  %v451_v54 = vld [vmem:[#allocation10 + $0x31] ss:$2 sm:$0xf]  ;;  %v315_v55 = vpop.f32.mrf.mxu0 }
  0xce   :  { %v492_v58 = vadd.f32 %v451_v54, %v403_v53  ;;  %374 = vst.msk [vmem:[#allocation10 + $0x38] sm:$0xff] %vm366_vm1, %v315_v55  ;;  %v427_v41 = vld [vmem:[#allocation10 + $0x90] ss:$2 sm:$0xf] }
  0xcf   :  { %v551_v60 = vld.sshfl [vmem:[#allocation1 + $0x20] sm:$0xff pattern:$0x75316420]  ;;  %386 = vst.msk [vmem:[#allocation10 + $0x98] sm:$0xff] %vm366_vm1, %v351_v56 }
  0xd0   :  { %558 = vst [vmem:[#allocation1 + $0x21] ss:$2 sm:$0xff] %v499_v57  ;;  %1083 = vmatmul.msk.f32.gmra.mxu1 %vm366_vm1, %v551_v60  ;;  %v475_v42 = vld [vmem:[#allocation10 + $0x91] ss:$2 sm:$0xf] }
  0xd1   :  { %546 = vst [vmem:[#allocation1 + $0x30] ss:$2 sm:$0xff] %v492_v58  ;;  %v504_v45 = vadd.f32 %v475_v42, %v427_v41  ;;  %v84_v57 = vld [vmem:[#allocation7] sm:$0xf] }
  0xd2   :  { %557 = vst [vmem:[#allocation1 + $0x20] ss:$2 sm:$0xff] %v498_v59  ;;  %1093 = vmatpush.msk.msra.mxu2 %vm908_vm3, %v84_v57 }
  0xd4   :  { %v354_v0 = vpop.f32.mrf.mxu3 }
  0xd5   :  { %v405_v61 = vld [vmem:[#allocation10 + $0x38] ss:$2 sm:$0xf]  ;;  %v453_v62 = vld [vmem:[#allocation10 + $0x39] ss:$2 sm:$0xf]  ;;  %v318_v63 = vpop.f32.mrf.mxu0 }
  0xd6   :  { %v493_v1 = vadd.f32 %v453_v62, %v405_v61  ;;  %375 = vst.msk [vmem:[#allocation10 + $0x40] sm:$0xff] %vm366_vm1, %v318_v63  ;;  %v429_v43 = vld [vmem:[#allocation10 + $0x98] ss:$2 sm:$0xf] }
  0xd7   :  { %387 = vst.msk [vmem:[#allocation10 + $0xa0] sm:$0xff] %vm366_vm1, %v354_v0  ;;  %v477_v44 = vld [vmem:[#allocation10 + $0x99] ss:$2 sm:$0xf] }
  0xd8   :  { %548 = vst [vmem:[#allocation1 + $0x31] ss:$2 sm:$0xff] %v493_v1  ;;  %v505_v46 = vadd.f32 %v477_v44, %v429_v43 }
  0xd9   :  { %v563_v17 = vld.sshfl [vmem:[#allocation1 + $0x20] sm:$0xff pattern:$0x75316420] }
  0xdc   :  { %v357_v9 = vpop.f32.mrf.mxu3 }
  0xdd   :  { %v407_v6 = vld [vmem:[#allocation10 + $0x40] ss:$2 sm:$0xf]  ;;  %v455_v7 = vld [vmem:[#allocation10 + $0x41] ss:$2 sm:$0xf]  ;;  %v321_v8 = vpop.f32.mrf.mxu0 }
  0xde   :  { %v494_v11 = vadd.f32 %v455_v7, %v407_v6  ;;  %376 = vst.msk [vmem:[#allocation10 + $0x48] sm:$0xff] %vm366_vm1, %v321_v8  ;;  %v431_v12 = vld [vmem:[#allocation10 + $0xa0] ss:$2 sm:$0xf] }
  0xdf   :  { %v552_v14 = vld.sshfl [vmem:[#allocation1 + $0x30] sm:$0xff pattern:$0x75316420]  ;;  %v479_v15 = vld [vmem:[#allocation10 + $0xa1] ss:$2 sm:$0xf] }
  0xe0   :  { %560 = vst [vmem:[#allocation1 + $0x31] ss:$2 sm:$0xff] %v501_v10  ;;  %1084 = vmatmul.msk.f32.gmra.mxu1 %vm366_vm1, %v552_v14  ;;  %v506_v16 = vadd.f32 %v479_v15, %v431_v12 }
  0xe1   :  { %559 = vst [vmem:[#allocation1 + $0x30] ss:$2 sm:$0xff] %v500_v13 }
  0xe2   :  { %553 = vst [vmem:[#allocation1] ss:$2 sm:$0xff] %v494_v11 }
  0xe3   :  { %569 = vst [vmem:[#allocation1 + $0x20] ss:$2 sm:$0xff] %v506_v16 }
  0xe4   :  { %388 = vst.msk [vmem:[#allocation10 + $0xa8] sm:$0xff] %vm366_vm1, %v357_v9  ;;  %v360_v22 = vpop.f32.mrf.mxu3 }
  0xe5   :  { %v409_v18 = vld [vmem:[#allocation10 + $0x48] ss:$2 sm:$0xf]  ;;  %v457_v19 = vld [vmem:[#allocation10 + $0x49] ss:$2 sm:$0xf]  ;;  %v324_v20 = vpop.f32.mrf.mxu0 }
  0xe6   :  { %v495_v21 = vadd.f32 %v457_v19, %v409_v18  ;;  %377 = vst.msk [vmem:[#allocation10 + $0x50] sm:$0xff] %vm366_vm1, %v324_v20 }
  0xe7   :  { %389 = vst.msk [vmem:[#allocation10 + $0xb0] sm:$0xff] %vm366_vm1, %v360_v22 }
  0xe8   :  { %554 = vst [vmem:[#allocation1 + $0x1] ss:$2 sm:$0xff] %v495_v21  ;;  %v564_v40 = vld.sshfl [vmem:[#allocation1 + $0x30] sm:$0xff pattern:$0x75316420] }
  0xeb   :  { %v433_v25 = vld [vmem:[#allocation10 + $0xa8] ss:$2 sm:$0xf]  ;;  %v481_v26 = vld [vmem:[#allocation10 + $0xa9] ss:$2 sm:$0xf] }
  0xec   :  { %v507_v29 = vadd.f32 %v481_v26, %v433_v25  ;;  %v363_v39 = vpop.f32.mrf.mxu3 }
  0xed   :  { %v411_v30 = vld [vmem:[#allocation10 + $0x50] ss:$2 sm:$0xf]  ;;  %v459_v31 = vld [vmem:[#allocation10 + $0x51] ss:$2 sm:$0xf] }
  0xee   :  { %v496_v33 = vadd.f32 %v459_v31, %v411_v30  ;;  %570 = vst [vmem:[#allocation1 + $0x21] ss:$2 sm:$0xff] %v507_v29  ;;  %v435_v34 = vld [vmem:[#allocation10 + $0xb0] ss:$2 sm:$0xf] }
  0xef   :  { %v561_v36 = vld.sshfl [vmem:[#allocation1] sm:$0xff pattern:$0x75316420]  ;;  %v483_v37 = vld [vmem:[#allocation10 + $0xb1] ss:$2 sm:$0xf] }
  0xf0   :  { %566 = vst [vmem:[#allocation1 + $0x1] ss:$2 sm:$0xff] %v503_v32  ;;  %1085 = vmatmul.msk.f32.gmra.mxu1 %vm366_vm1, %v561_v36  ;;  %v508_v38 = vadd.f32 %v483_v37, %v435_v34 }
  0xf1   :  { %565 = vst [vmem:[#allocation1] ss:$2 sm:$0xff] %v502_v35 }
  0xf2   :  { %555 = vst [vmem:[#allocation1 + $0x10] ss:$2 sm:$0xff] %v496_v33 }
  0xf3   :  { %571 = vst [vmem:[#allocation1 + $0x30] ss:$2 sm:$0xff] %v508_v38 }
  0xf4   :  { %390 = vst.msk [vmem:[#allocation10 + $0xb8] sm:$0xff] %vm366_vm1, %v363_v39 }
  0xf5   :  { %v575_v54 = vld.sshfl [vmem:[#allocation1 + $0x20] sm:$0xff pattern:$0x75316420]  ;;  %1026 = dma.vmem_to_hbm [thread:$0]  %s1019_s3, 3072, %s1021_s19, [#allocation4], %s1271_s7, %s1271_s7, %s1272_s8  }
  0xf8   :  { %v573_v52 = vld.sshfl [vmem:[#allocation1] sm:$0xff pattern:$0x75316420] }
  0xf9   :  { %v562_v47 = vld.sshfl [vmem:[#allocation1 + $0x10] sm:$0xff pattern:$0x75316420] }
  0xfa   :  { %567 = vst [vmem:[#allocation1 + $0x10] ss:$2 sm:$0xff] %v504_v45  ;;  %1086 = vmatmul.msk.f32.gmra.mxu1 %vm366_vm1, %v562_v47 }
  0xfb   :  { %568 = vst [vmem:[#allocation1 + $0x11] ss:$2 sm:$0xff] %v505_v46  ;;  %v437_v48 = vld [vmem:[#allocation10 + $0xb8] ss:$2 sm:$0xf] }
  0xfc   :  { %v485_v49 = vld [vmem:[#allocation10 + $0xb9] ss:$2 sm:$0xf] }
  0xfd   :  { %v509_v50 = vadd.f32 %v485_v49, %v437_v48 }
  0xff   :  { %572 = vst [vmem:[#allocation1 + $0x31] ss:$2 sm:$0xff] %v509_v50 }
 0x102   :  { %1087 = vmatmul.msk.f32.gmra.mxu1 %vm366_vm1, %v563_v17  ;;  %v574_v53 = vld.sshfl [vmem:[#allocation1 + $0x10] sm:$0xff pattern:$0x75316420] }
 0x106   :  { %v576_v51 = vld.sshfl [vmem:[#allocation1 + $0x30] sm:$0xff pattern:$0x75316420] }
 0x107   :  { %1092 = vmatmul.msk.f32.vlgmr.msrb.gmra.mxu2 %vm366_vm1, %v576_v51 }
 0x10a   :  { %1088 = vmatmul.msk.f32.gmra.mxu1 %vm366_vm1, %v564_v40 }
 0x112   :  { %1089 = vmatmul.msk.f32.gmra.mxu1 %vm366_vm1, %v573_v52 }
 0x11a   :  { %1090 = vmatmul.msk.f32.gmra.mxu1 %vm366_vm1, %v574_v53 }
 0x122   :  { %1091 = vmatmul.msk.f32.gmra.mxu1 %vm366_vm1, %v575_v54 }
 0x12d   :  { %v618_v55 = vpop.f32.mrf.mxu1 }
 0x12e   :  { %v666_v56 = vrot.slane %v618_v55, 4  ;;  %691 = vst.msk [vmem:[#allocation11] sm:$0xf] %vm690_vm2, %v618_v55 }
 0x130   :  { %692 = vst.msk [vmem:[#allocation11 + $0x4] sm:$0xf] %vm690_vm2, %v666_v56 }
 0x135   :  { %v715_v58 = vld [vmem:[#allocation11] ss:$2 sm:$0x3]  ;;  %v763_v59 = vld [vmem:[#allocation11 + $0x1] ss:$2 sm:$0x3] }
 0x136   :  { %v810_v60 = vadd.f32 %v763_v59, %v715_v58 }
 0x137   :  { %v717_v61 = vld [vmem:[#allocation11 + $0x4] ss:$2 sm:$0x3]  ;;  %v765_v62 = vld [vmem:[#allocation11 + $0x5] ss:$2 sm:$0x3] }
 0x138   :  { %v811_v63 = vadd.f32 %v765_v62, %v717_v61  ;;  %858 = vst [vmem:[#allocation1] ss:$4 sm:$0xff] %v810_v60 }
 0x13a   :  { %860 = vst [vmem:[#allocation1 + $0x1] ss:$4 sm:$0xff] %v811_v63 }
 0x13d   :  { %v621_v0 = vpop.f32.mrf.mxu1 }
 0x13e   :  { %v667_v1 = vrot.slane %v621_v0, 4  ;;  %693 = vst.msk [vmem:[#allocation11 + $0x8] sm:$0xf] %vm690_vm2, %v621_v0 }
 0x140   :  { %694 = vst.msk [vmem:[#allocation11 + $0xc] sm:$0xf] %vm690_vm2, %v667_v1 }
 0x145   :  { %v719_v2 = vld [vmem:[#allocation11 + $0x8] ss:$2 sm:$0x3]  ;;  %v767_v3 = vld [vmem:[#allocation11 + $0x9] ss:$2 sm:$0x3] }
 0x146   :  { %v812_v4 = vadd.f32 %v767_v3, %v719_v2 }
 0x147   :  { %v721_v5 = vld [vmem:[#allocation11 + $0xc] ss:$2 sm:$0x3]  ;;  %v769_v6 = vld [vmem:[#allocation11 + $0xd] ss:$2 sm:$0x3] }
 0x148   :  { %v813_v7 = vadd.f32 %v769_v6, %v721_v5  ;;  %862 = vst [vmem:[#allocation1 + $0x2] ss:$4 sm:$0xff] %v812_v4 }
 0x14a   :  { %864 = vst [vmem:[#allocation1 + $0x3] ss:$4 sm:$0xff] %v813_v7 }
 0x14d   :  { %v624_v8 = vpop.f32.mrf.mxu1 }
 0x14e   :  { %v668_v9 = vrot.slane %v624_v8, 4  ;;  %695 = vst.msk [vmem:[#allocation11 + $0x10] sm:$0xf] %vm690_vm2, %v624_v8 }
 0x150   :  { %696 = vst.msk [vmem:[#allocation11 + $0x14] sm:$0xf] %vm690_vm2, %v668_v9 }
 0x151   :  { %v873_v10 = vld.sshfl [vmem:[#allocation1] sm:$0xff pattern:$0x73625140] }
 0x152   :  { %1094 = vmatmul.msk.f32.vlgmr.msra.gmra.mxu2 %vm895_vm4, %v873_v10 }
 0x155   :  { %v723_v11 = vld [vmem:[#allocation11 + $0x10] ss:$2 sm:$0x3]  ;;  %v771_v12 = vld [vmem:[#allocation11 + $0x11] ss:$2 sm:$0x3] }
 0x156   :  { %v814_v13 = vadd.f32 %v771_v12, %v723_v11 }
 0x157   :  { %v725_v14 = vld [vmem:[#allocation11 + $0x14] ss:$2 sm:$0x3]  ;;  %v773_v15 = vld [vmem:[#allocation11 + $0x15] ss:$2 sm:$0x3] }
 0x158   :  { %v815_v16 = vadd.f32 %v773_v15, %v725_v14  ;;  %866 = vst [vmem:[#allocation1 + $0x20] ss:$4 sm:$0xff] %v814_v13 }
 0x15a   :  { %868 = vst [vmem:[#allocation1 + $0x21] ss:$4 sm:$0xff] %v815_v16 }
 0x15d   :  { %v627_v17 = vpop.f32.mrf.mxu1 }
 0x15e   :  { %v669_v18 = vrot.slane %v627_v17, 4  ;;  %697 = vst.msk [vmem:[#allocation11 + $0x18] sm:$0xf] %vm690_vm2, %v627_v17 }
 0x160   :  { %698 = vst.msk [vmem:[#allocation11 + $0x1c] sm:$0xf] %vm690_vm2, %v669_v18 }
 0x165   :  { %v727_v19 = vld [vmem:[#allocation11 + $0x18] ss:$2 sm:$0x3]  ;;  %v775_v20 = vld [vmem:[#allocation11 + $0x19] ss:$2 sm:$0x3] }
 0x166   :  { %v816_v21 = vadd.f32 %v775_v20, %v727_v19 }
 0x167   :  { %v729_v22 = vld [vmem:[#allocation11 + $0x1c] ss:$2 sm:$0x3]  ;;  %v777_v23 = vld [vmem:[#allocation11 + $0x1d] ss:$2 sm:$0x3] }
 0x168   :  { %v817_v24 = vadd.f32 %v777_v23, %v729_v22  ;;  %870 = vst [vmem:[#allocation1 + $0x22] ss:$4 sm:$0xff] %v816_v21 }
 0x16a   :  { %872 = vst [vmem:[#allocation1 + $0x23] ss:$4 sm:$0xff] %v817_v24 }
 0x16d   :  { %v630_v25 = vpop.f32.mrf.mxu1 }
 0x16e   :  { %v670_v26 = vrot.slane %v630_v25, 4  ;;  %699 = vst.msk [vmem:[#allocation11 + $0x20] sm:$0xf] %vm690_vm2, %v630_v25 }
 0x170   :  { %700 = vst.msk [vmem:[#allocation11 + $0x24] sm:$0xf] %vm690_vm2, %v670_v26 }
 0x171   :  { %v874_v27 = vld.sshfl [vmem:[#allocation1 + $0x20] sm:$0xff pattern:$0x73625140] }
 0x172   :  { %1095 = vmatmul.msk.f32.gmra.mxu2 %vm895_vm4, %v874_v27 }
 0x175   :  { %v731_v28 = vld [vmem:[#allocation11 + $0x20] ss:$2 sm:$0x3]  ;;  %v779_v29 = vld [vmem:[#allocation11 + $0x21] ss:$2 sm:$0x3] }
 0x176   :  { %v818_v30 = vadd.f32 %v779_v29, %v731_v28 }
 0x177   :  { %v733_v31 = vld [vmem:[#allocation11 + $0x24] ss:$2 sm:$0x3]  ;;  %v781_v32 = vld [vmem:[#allocation11 + $0x25] ss:$2 sm:$0x3]  ;;  %v633_v33 = vpop.f32.mrf.mxu1 }
 0x178   :  { %v819_v34 = vadd.f32 %v781_v32, %v733_v31  ;;  %875 = vst [vmem:[#allocation1] ss:$4 sm:$0xff] %v818_v30  ;;  %v671_v35 = vrot.slane %v633_v33, 4 }
 0x179   :  { %701 = vst.msk [vmem:[#allocation11 + $0x28] sm:$0xf] %vm690_vm2, %v633_v33 }
 0x17a   :  { %876 = vst [vmem:[#allocation1 + $0x1] ss:$4 sm:$0xff] %v819_v34 }
 0x17b   :  { %702 = vst.msk [vmem:[#allocation11 + $0x2c] sm:$0xf] %vm690_vm2, %v671_v35 }
 0x17f   :  { %v636_v36 = vpop.f32.mrf.mxu1 }
 0x180   :  { %v735_v37 = vld [vmem:[#allocation11 + $0x28] ss:$2 sm:$0x3]  ;;  %v783_v38 = vld [vmem:[#allocation11 + $0x29] ss:$2 sm:$0x3] }
 0x181   :  { %v820_v39 = vadd.f32 %v783_v38, %v735_v37  ;;  %v672_v40 = vrot.slane %v636_v36, 4  ;;  %703 = vst.msk [vmem:[#allocation11 + $0x30] sm:$0xf] %vm690_vm2, %v636_v36 }
 0x182   :  { %v737_v41 = vld [vmem:[#allocation11 + $0x2c] ss:$2 sm:$0x3]  ;;  %v785_v42 = vld [vmem:[#allocation11 + $0x2d] ss:$2 sm:$0x3] }
 0x183   :  { %v821_v43 = vadd.f32 %v785_v42, %v737_v41  ;;  %877 = vst [vmem:[#allocation1 + $0x2] ss:$4 sm:$0xff] %v820_v39 }
 0x184   :  { %704 = vst.msk [vmem:[#allocation11 + $0x34] sm:$0xf] %vm690_vm2, %v672_v40 }
 0x185   :  { %878 = vst [vmem:[#allocation1 + $0x3] ss:$4 sm:$0xff] %v821_v43 }
 0x187   :  { %v639_v44 = vpop.f32.mrf.mxu1 }
 0x188   :  { %v739_v45 = vld [vmem:[#allocation11 + $0x30] ss:$2 sm:$0x3]  ;;  %v787_v46 = vld [vmem:[#allocation11 + $0x31] ss:$2 sm:$0x3] }
 0x189   :  { %v822_v47 = vadd.f32 %v787_v46, %v739_v45  ;;  %v673_v48 = vrot.slane %v639_v44, 4  ;;  %705 = vst.msk [vmem:[#allocation11 + $0x38] sm:$0xf] %vm690_vm2, %v639_v44 }
 0x18a   :  { %v651_v51 = vpop.f32.mrf.mxu2 }
 0x18b   :  { %v741_v49 = vld [vmem:[#allocation11 + $0x34] ss:$2 sm:$0x3]  ;;  %v789_v50 = vld [vmem:[#allocation11 + $0x35] ss:$2 sm:$0x3] }
 0x18c   :  { %v823_v52 = vadd.f32 %v789_v50, %v741_v49  ;;  %879 = vst [vmem:[#allocation1 + $0x20] ss:$4 sm:$0xff] %v822_v47  ;;  %v883_v53 = vld.sshfl [vmem:[#allocation1] sm:$0xff pattern:$0x73625140]  ;;  %v677_v54 = vrot.slane %v651_v51, 4 }
 0x18d   :  { %706 = vst.msk [vmem:[#allocation11 + $0x3c] sm:$0xf] %vm690_vm2, %v673_v48  ;;  %1096 = vmatmul.msk.f32.gmra.mxu2 %vm895_vm4, %v883_v53 }
 0x18e   :  { %880 = vst [vmem:[#allocation1 + $0x21] ss:$4 sm:$0xff] %v823_v52 }
 0x18f   :  { %v642_v55 = vpop.f32.mrf.mxu1  ;;  %713 = vst.msk [vmem:[#allocation11 + $0x58] sm:$0xf] %vm690_vm2, %v651_v51 }
 0x190   :  { %v743_v56 = vld [vmem:[#allocation11 + $0x38] ss:$2 sm:$0x3]  ;;  %v791_v57 = vld [vmem:[#allocation11 + $0x39] ss:$2 sm:$0x3] }
 0x191   :  { %v824_v58 = vadd.f32 %v791_v57, %v743_v56  ;;  %v674_v59 = vrot.slane %v642_v55, 4  ;;  %707 = vst.msk [vmem:[#allocation11 + $0x40] sm:$0xf] %vm690_vm2, %v642_v55 }
 0x192   :  { %714 = vst.msk [vmem:[#allocation11 + $0x5c] sm:$0xf] %vm690_vm2, %v677_v54 }
 0x193   :  { %881 = vst [vmem:[#allocation1 + $0x22] ss:$4 sm:$0xff] %v824_v58 }
 0x194   :  { %v745_v60 = vld [vmem:[#allocation11 + $0x3c] ss:$2 sm:$0x3]  ;;  %v793_v61 = vld [vmem:[#allocation11 + $0x3d] ss:$2 sm:$0x3] }
 0x195   :  { %v825_v62 = vadd.f32 %v793_v61, %v745_v60  ;;  %708 = vst.msk [vmem:[#allocation11 + $0x44] sm:$0xf] %vm690_vm2, %v674_v59 }
 0x196   :  { %v759_v4 = vld [vmem:[#allocation11 + $0x58] ss:$2 sm:$0x3]  ;;  %v807_v6 = vld [vmem:[#allocation11 + $0x59] ss:$2 sm:$0x3] }
 0x197   :  { %882 = vst [vmem:[#allocation1 + $0x23] ss:$4 sm:$0xff] %v825_v62  ;;  %v645_v63 = vpop.f32.mrf.mxu1  ;;  %v832_v11 = vadd.f32 %v807_v6, %v759_v4 }
 0x198   :  { %v747_v0 = vld [vmem:[#allocation11 + $0x40] ss:$2 sm:$0x3]  ;;  %v795_v1 = vld [vmem:[#allocation11 + $0x41] ss:$2 sm:$0x3] }
 0x199   :  { %v826_v2 = vadd.f32 %v795_v1, %v747_v0  ;;  %v675_v3 = vrot.slane %v645_v63, 4  ;;  %709 = vst.msk [vmem:[#allocation11 + $0x48] sm:$0xf] %vm690_vm2, %v645_v63  ;;  %v761_v5 = vld [vmem:[#allocation11 + $0x5c] ss:$2 sm:$0x3] }
 0x19a   :  { %v809_v7 = vld [vmem:[#allocation11 + $0x5d] ss:$2 sm:$0x3] }
 0x19b   :  { %885 = vst [vmem:[#allocation1] ss:$4 sm:$0xff] %v826_v2  ;;  %v833_v12 = vadd.f32 %v809_v7, %v761_v5 }
 0x19c   :  { %v749_v8 = vld [vmem:[#allocation11 + $0x44] ss:$2 sm:$0x3]  ;;  %v797_v9 = vld [vmem:[#allocation11 + $0x45] ss:$2 sm:$0x3] }
 0x19d   :  { %v827_v10 = vadd.f32 %v797_v9, %v749_v8  ;;  %710 = vst.msk [vmem:[#allocation11 + $0x4c] sm:$0xf] %vm690_vm2, %v675_v3 }
 0x19e   :  { %v884_v13 = vld.sshfl [vmem:[#allocation1 + $0x20] sm:$0xff pattern:$0x73625140] }
 0x19f   :  { %886 = vst [vmem:[#allocation1 + $0x1] ss:$4 sm:$0xff] %v827_v10  ;;  %1097 = vmatmul.msk.f32.gmra.mxu2 %vm895_vm4, %v884_v13  ;;  %v648_v14 = vpop.f32.mrf.mxu1 }
 0x1a0   :  { %v751_v15 = vld [vmem:[#allocation11 + $0x48] ss:$2 sm:$0x3]  ;;  %v799_v16 = vld [vmem:[#allocation11 + $0x49] ss:$2 sm:$0x3] }
 0x1a1   :  { %v828_v17 = vadd.f32 %v799_v16, %v751_v15  ;;  %891 = vst [vmem:[#allocation1 + $0x22] ss:$4 sm:$0xff] %v832_v11  ;;  %v676_v18 = vrot.slane %v648_v14, 4 }
 0x1a2   :  { %892 = vst [vmem:[#allocation1 + $0x23] ss:$4 sm:$0xff] %v833_v12 }
 0x1a3   :  { %887 = vst [vmem:[#allocation1 + $0x2] ss:$4 sm:$0xff] %v828_v17 }
 0x1a4   :  { %v753_v19 = vld [vmem:[#allocation11 + $0x4c] ss:$2 sm:$0x3]  ;;  %v801_v20 = vld [vmem:[#allocation11 + $0x4d] ss:$2 sm:$0x3] }
 0x1a5   :  { %v829_v21 = vadd.f32 %v801_v20, %v753_v19  ;;  %711 = vst.msk [vmem:[#allocation11 + $0x50] sm:$0xf] %vm690_vm2, %v648_v14 }
 0x1a6   :  { %712 = vst.msk [vmem:[#allocation11 + $0x54] sm:$0xf] %vm690_vm2, %v676_v18 }
 0x1a7   :  { %888 = vst [vmem:[#allocation1 + $0x3] ss:$4 sm:$0xff] %v829_v21  ;;  %1039 = dma.vmem_to_hbm [thread:$0]  %s1032_s21, 1536, %s1034_s24, [#allocation12], %s1277_s25, %s1277_s25, %s1278_s26  }
 0x1ac   :  { %v755_v22 = vld [vmem:[#allocation11 + $0x50] ss:$2 sm:$0x3]  ;;  %v803_v23 = vld [vmem:[#allocation11 + $0x51] ss:$2 sm:$0x3] }
 0x1ad   :  { %v757_v24 = vld [vmem:[#allocation11 + $0x54] ss:$2 sm:$0x3]  ;;  %v805_v25 = vld [vmem:[#allocation11 + $0x55] ss:$2 sm:$0x3]  ;;  %v830_v26 = vadd.f32 %v803_v23, %v755_v22 }
 0x1ae   :  { %v831_v27 = vadd.f32 %v805_v25, %v757_v24  ;;  %v893_v28 = vld.sshfl [vmem:[#allocation1] sm:$0xff pattern:$0x73625140] }
 0x1af   :  { %889 = vst [vmem:[#allocation1 + $0x20] ss:$4 sm:$0xff] %v830_v26  ;;  %1098 = vmatmul.msk.f32.gmra.mxu2 %vm895_vm4, %v893_v28 }
 0x1b0   :  { %890 = vst [vmem:[#allocation1 + $0x21] ss:$4 sm:$0xff] %v831_v27 }
 0x1b7   :  { %v894_v29 = vld.sshfl [vmem:[#allocation1 + $0x20] sm:$0xff pattern:$0x73625140] }
 0x1b8   :  { %1099 = vmatmul.msk.f32.gmra.mxu2 %vm895_vm4, %v894_v29 }
 0x1d5   :  { %v929_v30 = vpop.f32.mrf.mxu2 }
 0x1d6   :  { %v953_v31 = vrot.slane %v929_v30, 2  ;;  %v954_v32 = vrot.slane %v929_v30, 4  ;;  %v955_v33 = vrot.slane %v929_v30, 6  ;;  %990 = vst.msk [vmem:[%s1533_s6] sm:$0x3] %vm989_vm5, %v929_v30 }
 0x1d8   :  { %991 = vst.msk [vmem:[%s1533_s6 + $0x2] sm:$0x3] %vm989_vm5, %v953_v31 }
 0x1d9   :  { %992 = vst.msk [vmem:[%s1533_s6 + $0x4] sm:$0x3] %vm989_vm5, %v954_v32 }
 0x1da   :  { %993 = vst.msk [vmem:[%s1533_s6 + $0x6] sm:$0x3] %vm989_vm5, %v955_v33 }
 0x1f5   :  { %v932_v34 = vpop.f32.mrf.mxu2 }
 0x1f6   :  { %v956_v35 = vrot.slane %v932_v34, 2  ;;  %v957_v36 = vrot.slane %v932_v34, 4  ;;  %v958_v37 = vrot.slane %v932_v34, 6  ;;  %994 = vst.msk [vmem:[%s1533_s6 + $0x8] sm:$0x3] %vm989_vm5, %v932_v34 }
 0x1f8   :  { %995 = vst.msk [vmem:[%s1533_s6 + $0xa] sm:$0x3] %vm989_vm5, %v956_v35 }
 0x1f9   :  { %996 = vst.msk [vmem:[%s1533_s6 + $0xc] sm:$0x3] %vm989_vm5, %v957_v36 }
 0x1fa   :  { %997 = vst.msk [vmem:[%s1533_s6 + $0xe] sm:$0x3] %vm989_vm5, %v958_v37 }
 0x210   :  { %v935_v38 = vpop.f32.mrf.mxu2 }
 0x211   :  { %v959_v39 = vrot.slane %v935_v38, 2  ;;  %v960_v40 = vrot.slane %v935_v38, 4  ;;  %v961_v41 = vrot.slane %v935_v38, 6  ;;  %998 = vst.msk [vmem:[%s1533_s6 + $0x10] sm:$0x3] %vm989_vm5, %v935_v38 }
 0x213   :  { %999 = vst.msk [vmem:[%s1533_s6 + $0x12] sm:$0x3] %vm989_vm5, %v959_v39 }
 0x214   :  { %1000 = vst.msk [vmem:[%s1533_s6 + $0x14] sm:$0x3] %vm989_vm5, %v960_v40 }
 0x215   :  { %1001 = vst.msk [vmem:[%s1533_s6 + $0x16] sm:$0x3] %vm989_vm5, %v961_v41 }
 0x222   :  { %v938_v42 = vpop.f32.mrf.mxu2 }
 0x223   :  { %v962_v43 = vrot.slane %v938_v42, 2  ;;  %v963_v44 = vrot.slane %v938_v42, 4  ;;  %v964_v45 = vrot.slane %v938_v42, 6  ;;  %1002 = vst.msk [vmem:[%s1533_s6 + $0x18] sm:$0x3] %vm989_vm5, %v938_v42 }
 0x225   :  { %1003 = vst.msk [vmem:[%s1533_s6 + $0x1a] sm:$0x3] %vm989_vm5, %v962_v43 }
 0x226   :  { %1004 = vst.msk [vmem:[%s1533_s6 + $0x1c] sm:$0x3] %vm989_vm5, %v963_v44 }
 0x227   :  { %1005 = vst.msk [vmem:[%s1533_s6 + $0x1e] sm:$0x3] %vm989_vm5, %v964_v45 }
 0x232   :  { %v941_v46 = vpop.f32.mrf.mxu2 }
 0x233   :  { %v965_v47 = vrot.slane %v941_v46, 2  ;;  %v966_v48 = vrot.slane %v941_v46, 4  ;;  %v967_v49 = vrot.slane %v941_v46, 6  ;;  %1006 = vst.msk [vmem:[%s1533_s6 + $0x20] sm:$0x3] %vm989_vm5, %v941_v46 }
 0x235   :  { %1007 = vst.msk [vmem:[%s1533_s6 + $0x22] sm:$0x3] %vm989_vm5, %v965_v47 }
 0x236   :  { %1008 = vst.msk [vmem:[%s1533_s6 + $0x24] sm:$0x3] %vm989_vm5, %v966_v48 }
 0x237   :  { %1009 = vst.msk [vmem:[%s1533_s6 + $0x26] sm:$0x3] %vm989_vm5, %v967_v49 }
 0x23b   :  { %v944_v50 = vpop.f32.mrf.mxu2 }
 0x23c   :  { %v968_v51 = vrot.slane %v944_v50, 2  ;;  %v969_v52 = vrot.slane %v944_v50, 4  ;;  %v970_v53 = vrot.slane %v944_v50, 6  ;;  %1010 = vst.msk [vmem:[%s1533_s6 + $0x28] sm:$0x3] %vm989_vm5, %v944_v50 }
 0x23e   :  { %1011 = vst.msk [vmem:[%s1533_s6 + $0x2a] sm:$0x3] %vm989_vm5, %v968_v51 }
 0x23f   :  { %1012 = vst.msk [vmem:[%s1533_s6 + $0x2c] sm:$0x3] %vm989_vm5, %v969_v52 }
 0x240   :  { %1013 = vst.msk [vmem:[%s1533_s6 + $0x2e] sm:$0x3] %vm989_vm5, %v970_v53 }
 0x241   :  { %1265 = dma.done.wait [#allocation4], 3072  }
 0x242   :  { %1266 = vsyncadd [#allocation4], 4294964224 }
 0x243   :  { %1267 = dma.done.wait [#allocation12], 1536  }
 0x244   :  { %1268 = vsyncadd [#allocation12], 4294965760 }
 0x245   :  { %1052 = vsyncpa [#allocation3], 1 }
 0x246   :  { %1053 = vsyncpa [#allocation6], 1 }
 0x247   :  { %1054 = vsyncpa [#allocation9], 1 }
 0x248   :  { %1055 = vsyncpa [#allocation4], 1 }
 0x249   :  { %1056 = vsyncpa [#allocation12], 1 }

</bundles_post_ra>
